<compile_context>
chip_gen: v5e
topology: v5e:2x2
jax: 0.10.0
libtpu: 0.0.40
codegen_flags: <defaults>
</compile_context>

<pallas_src>
import functools

import jax
import jax.numpy as jnp
import numpy as np
from jax.experimental import pallas as pl
from jax.experimental.pallas import tpu as pltpu

VMEM = pltpu.MemorySpace.VMEM
SMEM = pltpu.MemorySpace.SMEM


# ----------------------------------------------------------------------------
# Single fused kernel: wavlm -> pad -> get_f0 -> get_x -> infer
# ----------------------------------------------------------------------------
def _vc_forward_kernel(n_frames,
                       f0m_ref, spkid_ref,              # SMEM scalars
                       frames_ref, mel_t_ref, spk_ref,  # per-call inputs
                       w_wavlm_ref, b_wavlm_ref, w_spk_t_ref, emb_tbl_ref,
                       w_gen_x_ref, w_gen_f0_ref,       # resident weights
                       y_ref):
    # --- wavlm: framed wav (T_pad, P) @ W (P, H) + b, GELU -> (T_pad, H) -----
    h = jnp.dot(frames_ref[...], w_wavlm_ref[...],
                preferred_element_type=jnp.float32)
    h = jax.nn.gelu(h + b_wavlm_ref[...], approximate=True)

    # --- F.pad(x, (0, T_mel - F)) : rows >= n_frames are exactly zero --------
    row = jax.lax.broadcasted_iota(jnp.int32, h.shape, 0)
    x = jnp.where(row < n_frames, h, 0.0)                        # (T_pad, H)

    # --- get_x: speaker conditioning, broadcast over time --------------------
    cond = jnp.dot(spk_ref[...], w_spk_t_ref[...],               # (1, H)
                   preferred_element_type=jnp.float32)
    spk_id = spkid_ref[0]
    sel = jax.lax.broadcasted_iota(jnp.int32, emb_tbl_ref.shape, 0) == spk_id
    emb = jnp.sum(jnp.where(sel, emb_tbl_ref[...], 0.0),
                  axis=0, keepdims=True)                         # (1, H)
    x = x + cond + emb                                           # (T_pad, H)

    # --- get_f0: sigmoid(mean over mel bins) * f0_mean_tgt -> (T_pad, 1) -----
    f0 = jax.nn.sigmoid(jnp.mean(mel_t_ref[...], axis=1, keepdims=True))
    f0 = f0 * f0m_ref[0]

    # --- infer: split projection on the MXU, rank-1 f0 term on the VPU -------
    y = jnp.dot(x, w_gen_x_ref[...], preferred_element_type=jnp.float32)
    y = y + f0 * w_gen_f0_ref[...]                               # (T_pad, hop)
    y_ref[...] = jnp.tanh(y)


def vc_forward(frames_pad, mel_t, spk_emb_row,
               w_wavlm, b_wavlm, w_spk_t, emb_table, w_gen_x, w_gen_f0,
               f0_mean_tgt, spk_id, n_frames):
    T_pad = frames_pad.shape[0]
    hop = w_gen_x.shape[1]
    smem = pl.BlockSpec(memory_space=SMEM)
    vmem = pl.BlockSpec(memory_space=VMEM)
    return pl.pallas_call(
        functools.partial(_vc_forward_kernel, n_frames),
        out_shape=jax.ShapeDtypeStruct((T_pad, hop), jnp.float32),
        in_specs=[smem, smem] + [vmem] * 9,
        out_specs=vmem,
    )(jnp.asarray([f0_mean_tgt], jnp.float32),
      jnp.asarray([spk_id], jnp.int32),
      frames_pad, mel_t, spk_emb_row,
      w_wavlm, b_wavlm, w_spk_t, emb_table, w_gen_x, w_gen_f0)


# ----------------------------------------------------------------------------
# Model wrapper (only cheap shape plumbing outside the kernel)
# ----------------------------------------------------------------------------
class Model:
    def __init__(self, frame_size=32, hidden=128, n_mels=8, spk_dim=16,
                 n_speakers=4, hop=128):
        self.P = frame_size
        self.H = hidden
        self.M = n_mels
        self.E = spk_dim
        self.hop = hop
        key = jax.random.PRNGKey(42)
        k1, k2, k3, k4, k5 = jax.random.split(key, 5)
        # deterministic synthetic parameters (pre-oriented for (time, hidden))
        self.w_wavlm = jax.random.normal(k1, (self.P, self.H), jnp.float32) * 0.1
        self.b_wavlm = jax.random.normal(k2, (1, self.H), jnp.float32) * 0.01
        w_spk = jax.random.normal(k3, (self.H, self.E), jnp.float32) * 0.1
        self.w_spk_t = jnp.asarray(w_spk.T)                    # (E, H)
        self.emb_table = jax.random.normal(k4, (n_speakers, self.H),
                                           jnp.float32) * 0.1
        w_gen = jax.random.normal(k5, (self.hop, self.H + 1), jnp.float32) * 0.1
        self.w_gen_x = jnp.asarray(w_gen[:, :self.H].T)        # (H, hop)
        self.w_gen_f0 = jnp.asarray(w_gen[:, self.H:].T)       # (1, hop)

    def _prepare(self, wav, mel, spk_emb):
        T_wav = wav.shape[0]
        assert T_wav % self.P == 0, "wav length must be a multiple of frame_size"
        n_frames = T_wav // self.P
        T_mel = mel.shape[1]
        assert T_mel >= n_frames, "mel must be at least as long as wavlm frames"

        frames = wav.reshape(n_frames, self.P)
        # zero-pad frames to T_mel rows; the kernel masks rows >= n_frames so
        # the result exactly matches F.pad(x, (0, T_mel - F)) after wavlm.
        frames = jnp.pad(frames, ((0, T_mel - n_frames), (0, 0)))   # (T_mel, P)
        mel_t = mel.T                                               # (T_mel, M)
        spk_row = spk_emb.reshape(1, self.E)
        return frames, mel_t, spk_row, n_frames

    def forward(self, wav, mel, f0_mean_tgt, spk_emb, spk_id):
        frames, mel_t, spk_row, n_frames = self._prepare(wav, mel, spk_emb)

        # --- fused wavlm -> pad -> get_f0 -> get_x -> infer -------------------
        y = vc_forward(frames, mel_t, spk_row,
                       self.w_wavlm, self.b_wavlm, self.w_spk_t,
                       self.emb_table, self.w_gen_x, self.w_gen_f0,
                       f0_mean_tgt, spk_id, n_frames)               # (T_mel, hop)

        # (time, hop) row-major flatten == old (hop, time).T.reshape(-1)
        # NOTE: the original torch forward has no `return` (returns None); we
        # return the synthesized waveform so the result can be materialized.
        return y.reshape(-1)

    # Pure-JAX reference of the exact same math (for correctness checking).
    def reference(self, wav, mel, f0_mean_tgt, spk_emb, spk_id):
        frames, mel_t, spk_row, n_frames = self._prepare(wav, mel, spk_emb)
        hi = jax.lax.Precision.HIGHEST
        h = jax.nn.gelu(jnp.dot(frames, self.w_wavlm, precision=hi)
                        + self.b_wavlm, approximate=True)
        row = jnp.arange(h.shape[0])[:, None]
        x = jnp.where(row < n_frames, h, 0.0)
        cond = jnp.dot(spk_row, self.w_spk_t, precision=hi)
        emb = self.emb_table[spk_id][None, :]
        x = x + cond + emb
        f0 = jax.nn.sigmoid(jnp.mean(mel_t, axis=1, keepdims=True)) * f0_mean_tgt
        y = jnp.tanh(jnp.dot(x, self.w_gen_x, precision=hi)
                     + f0 * self.w_gen_f0)
        return y.reshape(-1)


if __name__ == "__main__":
    key = jax.random.PRNGKey(0)
    kw, km, ks = jax.random.split(key, 3)

    # Small, TPU-friendly shapes (H and hop lane-dense at 128).
    P, H, M, E = 32, 128, 8, 16
    n_frames = 12
    T_mel = 16
    hop = 128

    wav = jax.random.normal(kw, (n_frames * P,), jnp.float32)       # raw audio
    mel = jax.random.normal(km, (M, T_mel), jnp.float32)            # (n_mels, T)
    f0_mean_tgt = 180.0
    spk_emb = jax.random.normal(ks, (E,), jnp.float32)
    spk_id = 2

    model = Model(frame_size=P, hidden=H, n_mels=M, spk_dim=E,
                  n_speakers=4, hop=hop)

    y = model.forward(wav, mel, f0_mean_tgt, spk_emb, spk_id)
    jax.block_until_ready(y)

    y_ref = model.reference(wav, mel, f0_mean_tgt, spk_emb, spk_id)
    jax.block_until_ready(y_ref)

    assert y.shape == (T_mel * hop,)
    assert bool(jnp.all(jnp.isfinite(y)))
    np.testing.assert_allclose(np.asarray(y), np.asarray(y_ref),
                               rtol=1e-3, atol=1e-3)
    print("KERNEL_OK")
</pallas_src>

<mosaic_0001>
module attributes {stable_mosaic.version = 11 : i64} {
  func.func @_vc_forward_kernel(%arg0: memref<1xf32, #tpu.memory_space<smem>>, %arg1: memref<1xi32, #tpu.memory_space<smem>>, %arg2: memref<16x32xf32, #tpu.memory_space<vmem>>, %arg3: memref<16x8xf32, #tpu.memory_space<vmem>>, %arg4: memref<1x16xf32, #tpu.memory_space<vmem>>, %arg5: memref<32x128xf32, #tpu.memory_space<vmem>>, %arg6: memref<1x128xf32, #tpu.memory_space<vmem>>, %arg7: memref<16x128xf32, #tpu.memory_space<vmem>>, %arg8: memref<4x128xf32, #tpu.memory_space<vmem>>, %arg9: memref<128x128xf32, #tpu.memory_space<vmem>>, %arg10: memref<1x128xf32, #tpu.memory_space<vmem>>, %arg11: memref<16x128xf32, #tpu.memory_space<vmem>>) attributes {dimension_semantics = [], scalar_prefetch = 0 : i64, scratch_operands = 0 : i64, tpu.core_type = #tpu.core_type<tc>} {
    %c0 = arith.constant 0 : index
    %c0_0 = arith.constant 0 : index
    %0 = vector.load %arg2[%c0, %c0_0] : memref<16x32xf32, #tpu.memory_space<vmem>>, vector<16x32xf32>
    %c0_1 = arith.constant 0 : index
    %c0_2 = arith.constant 0 : index
    %1 = vector.load %arg5[%c0_1, %c0_2] : memref<32x128xf32, #tpu.memory_space<vmem>>, vector<32x128xf32>
    %cst = arith.constant dense<0.000000e+00> : vector<16x128xf32>
    %2 = tpu.matmul %0, %1, %cst {dimension_numbers = #tpu.dot_dimension_numbers<[1], [0], [0], [1], [0, 0, 1, 1], [], []>} : vector<16x32xf32>, vector<32x128xf32>, vector<16x128xf32> -> vector<16x128xf32>
    %c0_3 = arith.constant 0 : index
    %c0_4 = arith.constant 0 : index
    %3 = vector.load %arg6[%c0_3, %c0_4] : memref<1x128xf32, #tpu.memory_space<vmem>>, vector<1x128xf32>
    %4 = vector.broadcast %3 : vector<1x128xf32> to vector<16x128xf32>
    %5 = arith.addf %2, %4 : vector<16x128xf32>
    %6 = arith.mulf %5, %5 : vector<16x128xf32>
    %7 = arith.mulf %5, %6 : vector<16x128xf32>
    %cst_5 = arith.constant 4.471500e-02 : f32
    %8 = vector.broadcast %cst_5 : f32 to vector<16x128xf32>
    %9 = arith.mulf %8, %7 : vector<16x128xf32>
    %10 = arith.addf %5, %9 : vector<16x128xf32>
    %cst_6 = arith.constant 0.797884583 : f32
    %11 = vector.broadcast %cst_6 : f32 to vector<16x128xf32>
    %12 = arith.mulf %11, %10 : vector<16x128xf32>
    %13 = math.tanh %12 : vector<16x128xf32>
    %cst_7 = arith.constant 1.000000e+00 : f32
    %14 = vector.broadcast %cst_7 : f32 to vector<16x128xf32>
    %15 = arith.addf %14, %13 : vector<16x128xf32>
    %cst_8 = arith.constant 5.000000e-01 : f32
    %16 = vector.broadcast %cst_8 : f32 to vector<16x128xf32>
    %17 = arith.mulf %16, %15 : vector<16x128xf32>
    %18 = arith.mulf %5, %17 : vector<16x128xf32>
    %19 = tpu.iota {dimensions = array<i32: 0>} : vector<16x128xi32>
    %c12_i32 = arith.constant 12 : i32
    %20 = vector.broadcast %c12_i32 : i32 to vector<16x128xi32>
    %21 = arith.cmpi slt, %19, %20 : vector<16x128xi32>
    %cst_9 = arith.constant 0.000000e+00 : f32
    %22 = vector.broadcast %cst_9 : f32 to vector<16x128xf32>
    %23 = arith.select %21, %18, %22 : vector<16x128xi1>, vector<16x128xf32>
    %c0_10 = arith.constant 0 : index
    %c0_11 = arith.constant 0 : index
    %24 = vector.load %arg4[%c0_10, %c0_11] : memref<1x16xf32, #tpu.memory_space<vmem>>, vector<1x16xf32>
    %c0_12 = arith.constant 0 : index
    %c0_13 = arith.constant 0 : index
    %25 = vector.load %arg7[%c0_12, %c0_13] : memref<16x128xf32, #tpu.memory_space<vmem>>, vector<16x128xf32>
    %cst_14 = arith.constant dense<0.000000e+00> : vector<1x128xf32>
    %26 = tpu.matmul %24, %25, %cst_14 {dimension_numbers = #tpu.dot_dimension_numbers<[1], [0], [0], [1], [0, 0, 1, 1], [], []>} : vector<1x16xf32>, vector<16x128xf32>, vector<1x128xf32> -> vector<1x128xf32>
    %c0_15 = arith.constant 0 : index
    %27 = memref.load %arg1[%c0_15] : memref<1xi32, #tpu.memory_space<smem>>
    %28 = tpu.iota {dimensions = array<i32: 0>} : vector<4x128xi32>
    %29 = vector.broadcast %27 : i32 to vector<4x128xi32>
    %30 = arith.cmpi eq, %28, %29 : vector<4x128xi32>
    %c0_16 = arith.constant 0 : index
    %c0_17 = arith.constant 0 : index
    %31 = vector.load %arg8[%c0_16, %c0_17] : memref<4x128xf32, #tpu.memory_space<vmem>>, vector<4x128xf32>
    %cst_18 = arith.constant 0.000000e+00 : f32
    %32 = vector.broadcast %cst_18 : f32 to vector<4x128xf32>
    %33 = arith.select %30, %31, %32 : vector<4x128xi1>, vector<4x128xf32>
    %cst_19 = arith.constant dense<0.000000e+00> : vector<128xf32>
    %34 = vector.multi_reduction <add>, %33, %cst_19 [0] : vector<4x128xf32> to vector<128xf32>
    %35 = vector.shape_cast %34 : vector<128xf32> to vector<1x128xf32>
    %36 = vector.broadcast %26 : vector<1x128xf32> to vector<16x128xf32>
    %37 = arith.addf %23, %36 : vector<16x128xf32>
    %38 = vector.broadcast %35 : vector<1x128xf32> to vector<16x128xf32>
    %39 = arith.addf %37, %38 : vector<16x128xf32>
    %c0_20 = arith.constant 0 : index
    %c0_21 = arith.constant 0 : index
    %40 = vector.load %arg3[%c0_20, %c0_21] : memref<16x8xf32, #tpu.memory_space<vmem>>, vector<16x8xf32>
    %cst_22 = arith.constant dense<0.000000e+00> : vector<16xf32>
    %41 = vector.multi_reduction <add>, %40, %cst_22 [1] : vector<16x8xf32> to vector<16xf32>
    %42 = vector.shape_cast %41 : vector<16xf32> to vector<16x1xf32>
    %cst_23 = arith.constant 8.000000e+00 : f32
    %43 = vector.broadcast %cst_23 : f32 to vector<16x1xf32>
    %44 = arith.divf %42, %43 : vector<16x1xf32>
    %45 = arith.negf %44 : vector<16x1xf32>
    %46 = math.exp %45 : vector<16x1xf32>
    %cst_24 = arith.constant 1.000000e+00 : f32
    %47 = vector.broadcast %cst_24 : f32 to vector<16x1xf32>
    %48 = arith.addf %47, %46 : vector<16x1xf32>
    %49 = arith.divf %47, %48 : vector<16x1xf32>
    %c0_25 = arith.constant 0 : index
    %50 = memref.load %arg0[%c0_25] : memref<1xf32, #tpu.memory_space<smem>>
    %51 = vector.broadcast %50 : f32 to vector<16x1xf32>
    %52 = arith.mulf %49, %51 : vector<16x1xf32>
    %c0_26 = arith.constant 0 : index
    %c0_27 = arith.constant 0 : index
    %53 = vector.load %arg9[%c0_26, %c0_27] : memref<128x128xf32, #tpu.memory_space<vmem>>, vector<128x128xf32>
    %cst_28 = arith.constant dense<0.000000e+00> : vector<16x128xf32>
    %54 = tpu.matmul %39, %53, %cst_28 {dimension_numbers = #tpu.dot_dimension_numbers<[1], [0], [0], [1], [0, 0, 1, 1], [], []>} : vector<16x128xf32>, vector<128x128xf32>, vector<16x128xf32> -> vector<16x128xf32>
    %c0_29 = arith.constant 0 : index
    %c0_30 = arith.constant 0 : index
    %55 = vector.load %arg10[%c0_29, %c0_30] : memref<1x128xf32, #tpu.memory_space<vmem>>, vector<1x128xf32>
    %56 = vector.broadcast %52 : vector<16x1xf32> to vector<16x128xf32>
    %57 = vector.broadcast %55 : vector<1x128xf32> to vector<16x128xf32>
    %58 = arith.mulf %56, %57 : vector<16x128xf32>
    %59 = arith.addf %54, %58 : vector<16x128xf32>
    %60 = math.tanh %59 : vector<16x128xf32>
    %c0_31 = arith.constant 0 : index
    %c0_32 = arith.constant 0 : index
    %61 = vector.load %arg11[%c0_31, %c0_32] : memref<16x128xf32, #tpu.memory_space<vmem>>, vector<16x128xf32>
    tpu.vector_store %arg11[%c0_31, %c0_32], %60 {strides = array<i32>} : memref<16x128xf32, #tpu.memory_space<vmem>>, vector<16x128xf32>,
    return
  }
}

</mosaic_0001>

<bundles_post_ra>
// kernel: tpu_custom_call.1
= control target key start
LH: loop header
LB: loop body
LE: loop exit
PB: predicated region body
PF: predicated region fallthrough
CT: control target
= control target key end

     0   :  { %18 = vsyncpa [#allocation5], 0  ;;  %s680_s0 = inlined_call_operand.<no memory space> [shape: f32[1], index: 0, kind: input, shape index: {}]   ;;  %s681_s1 = inlined_call_operand.<no memory space> [shape: s32[1], index: 1, kind: input, shape index: {}]   ;;  %s682_s2 = inlined_call_operand.vmem [shape: f32[16,32], index: 2, kind: input, shape index: {}]   ;;  %s683_s3 = inlined_call_operand.vmem [shape: f32[16,8], index: 3, kind: input, shape index: {}]   ;;  %s684_s4 = inlined_call_operand.hbm [shape: f32[1,16], index: 4, kind: input, shape index: {}]   ;;  %s685_s5 = inlined_call_operand.hbm [shape: f32[32,128], index: 5, kind: input, shape index: {}]   ;;  %s686_s6 = inlined_call_operand.hbm [shape: f32[1,128], index: 6, kind: input, shape index: {}]   ;;  %s687_s7 = inlined_call_operand.vmem [shape: f32[16,128], index: 7, kind: input, shape index: {}]   ;;  %s688_s8 = inlined_call_operand.hbm [shape: f32[4,128], index: 8, kind: input, shape index: {}]   ;;  %s689_s9 = inlined_call_operand.hbm [shape: f32[128,128], index: 9, kind: input, shape index: {}]   ;;  %s690_s10 = inlined_call_operand.vmem [shape: f32[1,128], index: 10, kind: input, shape index: {}]   ;;  %s691_s11 = inlined_call_operand.hbm [shape: f32[16,128], index: 11, kind: output, shape index: {}]  }
   0x1   :  { %19 = vsyncpa [#allocation8], 0 }
   0x2   :  { %20 = vsyncpa [#allocation11], 0  ;;  %s45_s19 = sshll.u32 %s685_s5, 4  ;;  %s46_s19 = int_to_ptr.hbm [resolvable:$true] %s45_s19 }
   0x3   :  { %21 = vsyncpa [#allocation6], 0  ;;  %s555_s20 = smov [#allocation7]   ;;  %s72_s24 = sshll.u32 %s688_s8, 4  ;;  %s73_s24 = int_to_ptr.hbm [resolvable:$true] %s72_s24 }
   0x4   :  { %s47_s21 = sshll.u32 %s555_s20, 4  ;;  %s556_s25 = smov 128   ;;  %s48_s21 = int_to_ptr.vmem [resolvable:$true] %s47_s21 }
   0x5   :  { %s557_s26 = smov 8   ;;  %s558_s27 = smov [#allocation10]  }
   0x6   :  { %53 = dma.hbm_to_vmem [thread:$0]  %s46_s19, 512, %s48_s21, [#allocation8], %s556_s25, %s556_s25, %s557_s26  }
   0x7   :  { %s74_s28 = sshll.u32 %s558_s27, 4  ;;  %s35_s30 = sshll.u32 %s684_s4, 4  ;;  %s75_s28 = int_to_ptr.vmem [resolvable:$true] %s74_s28  ;;  %s36_s30 = int_to_ptr.hbm [resolvable:$true] %s35_s30 }
   0x8   :  { %77 = dma.hbm_to_vmem [thread:$0]  %s73_s24, 64, %s75_s28, [#allocation11]  }
   0x9   :  { %s59_s8 = sshll.u32 %s686_s6, 4  ;;  %s559_s14 = smov [#allocation4]   ;;  %s60_s8 = int_to_ptr.hbm [resolvable:$true] %s59_s8 }
   0xa   :  { %s37_s15 = sshll.u32 %s559_s14, 4  ;;  %s560_s16 = smov [#allocation9]   ;;  %s38_s15 = int_to_ptr.vmem [resolvable:$true] %s37_s15 }
   0xb   :  { %40 = dma.hbm_to_vmem [thread:$0]  %s36_s30, 16, %s38_s15, [#allocation5]  }
   0xc   :  { %s61_s17 = sshll.u32 %s560_s16, 4  ;;  %s82_s20 = sshll.u32 %s689_s9, 4  ;;  %s62_s17 = int_to_ptr.vmem [resolvable:$true] %s61_s17  ;;  %s83_s20 = int_to_ptr.hbm [resolvable:$true] %s82_s20 }
   0xd   :  { %64 = dma.hbm_to_vmem [thread:$0]  %s60_s8, 16, %s62_s17, [#allocation8]  }
   0xe   :  { %s561_s4 = smov [#allocation12]  }
   0xf   :  { %s84_s21 = sshll.u32 %s561_s4, 4  ;;  %s85_s21 = int_to_ptr.vmem [resolvable:$true] %s84_s21 }
  0x10   :  { %90 = dma.hbm_to_vmem [thread:$0]  %s83_s20, 2048, %s85_s21, [#allocation11], %s556_s25, %s556_s25, %s557_s26  }
  0x11   :  { %547 = dma.done.wait [#allocation5], 16  }
  0x12   :  { %548 = vsyncadd [#allocation5], 4294967280 }
  0x13   :  { %549 = dma.done.wait [#allocation8], 528  }
  0x14   :  { %550 = vsyncadd [#allocation8], 4294966768 }
  0x15   :  { %551 = dma.done.wait [#allocation11], 2112  }
  0x16   :  { %552 = vsyncadd [#allocation11], 4294965184  ;;  %v118_v0 = vld [vmem:[#allocation7 + $0x18] sm:$0xff]  ;;  %v117_v1 = vld [vmem:[#allocation7 + $0x10] sm:$0xff]  ;;  %vm225_vm0 = vcmask 64512   ;;  %vm181_vm1 = vcmask 130048   ;;  %v171_v25 = vlaneseq  ;;  %v206_v28 = vstv %s681_s1 }
  0x17   :  { %142 = vmatpush.msra.mxu0 %v118_v0  ;;  %v116_v2 = vld [vmem:[#allocation7 + $0x8] sm:$0xff]  ;;  %v179_v4 = vld [vmem:[%s687_s7] sm:$0xff]  ;;  %vm123_vm2 = vcmask 261120   ;;  %v297_v12 = vld [vmem:[#allocation12 + $0x70] sm:$0xff]  ;;  %vm210_vm4 = vcmask 1043456   ;;  %s338_s17 = sshll.u32 %s691_s11, 4  ;;  %s339_s17 = int_to_ptr.hbm [resolvable:$true] %s338_s17 }
  0x18   :  { %v180_v3 = vld [vmem:[%s687_s7 + $0x8] sm:$0xff]  ;;  %v178_v5 = vld [vmem:[#allocation4] sm:$0x1]  ;;  %v296_v13 = vld [vmem:[#allocation12 + $0x68] sm:$0xff]  ;;  %v172_v27 = vshrl.u32 %v171_v25, 7 }
  0x19   :  { %143 = vmatpush.msra.mxu0 %v117_v1  ;;  %199 = vmatpush.msra.mxu1 %v180_v3  ;;  %v298_v6 = vld [vmem:[#allocation12 + $0x78] sm:$0xff]  ;;  %v114_v11 = vld [vmem:[%s682_s2 + $0x8] sm:$0xff]  ;;  %v293_v18 = vld [vmem:[#allocation12 + $0x50] sm:$0xff] }
  0x1a   :  { %v223_v7 = vld [vmem:[%s683_s3] sm:$0xff]  ;;  %305 = vmatpush.msra.mxu2 %v298_v6  ;;  %358 = vmatpush.msra.mxu3 %v298_v6  ;;  %v295_v14 = vld [vmem:[#allocation12 + $0x60] sm:$0xff]  ;;  %v292_v19 = vld [vmem:[#allocation12 + $0x48] sm:$0xff]  ;;  %vm207_vm3 = vcmp.eq.s32.totalorder %v172_v27, %v206_v28  ;;  %v173_v0 = vadd.s32 8, %v172_v27 }
  0x1b   :  { %v115_v8 = vld [vmem:[#allocation7] sm:$0xff]  ;;  %v226_v9 = vsel %vm225_vm0, %v223_v7, 0.0  ;;  %144 = vmatpush.msra.mxu0 %v116_v2  ;;  %200 = vmatpush.msra.mxu1 %v179_v4  ;;  %v289_v22 = vld [vmem:[#allocation12 + $0x30] sm:$0xff]  ;;  %v288_v23 = vld [vmem:[#allocation12 + $0x28] sm:$0xff] }
  0x1c   :  { %v113_v10 = vld [vmem:[%s682_s2] sm:$0xff]  ;;  %355 = vmatmul.msk.f32.vlgmr.msra.gmra.mxu1 %vm181_vm1, %v178_v5  ;;  %227 = vadd.xlane.f32.xlu0 %v226_v9  ;;  %v224_v16 = vld [vmem:[%s683_s3 + $0x8] sm:$0xff]  ;;  %v285_v29 = vld [vmem:[#allocation12 + $0x10] sm:$0xff]  ;;  %vm175_vm5 = vcmp.lt.s32.totalorder %v173_v0, 12 }
  0x1d   :  { %145 = vmatpush.msra.mxu0 %v115_v8  ;;  %306 = vmatpush.msra.mxu2 %v297_v12  ;;  %v294_v15 = vld [vmem:[#allocation12 + $0x58] sm:$0xff]  ;;  %v229_v17 = vsel %vm225_vm0, %v224_v16, 0.0  ;;  %v291_v20 = vld [vmem:[#allocation12 + $0x40] sm:$0xff]  ;;  %v284_v30 = vld [vmem:[#allocation12 + $0x8] sm:$0xff]  ;;  %v562_v8 = vmov 8.0  }
  0x1e   :  { %353 = vmatmul.msk.f32.vlgmr.msra.gmra.mxu0 %vm123_vm2, %v113_v10  ;;  %359 = vmatpush.msra.mxu3 %v297_v12  ;;  %v290_v21 = vld [vmem:[#allocation12 + $0x38] sm:$0xff]  ;;  %v287_v24 = vld [vmem:[#allocation12 + $0x20] sm:$0xff] }
  0x1f   :  { %307 = vmatpush.msra.mxu2 %v296_v13  ;;  %v286_v26 = vld [vmem:[#allocation12 + $0x18] sm:$0xff]  ;;  %v283_v32 = vld [vmem:[#allocation12] sm:$0xff] }
  0x20   :  { %360 = vmatpush.msra.mxu3 %v296_v13  ;;  %v208_v31 = vld [vmem:[#allocation10] sm:$0xf]  ;;  %v383_v33 = vld [vmem:[#allocation9] ss:$0 sm:$0xff] }
  0x21   :  { %308 = vmatpush.msra.mxu2 %v295_v14  ;;  %v209_v34 = vsel %vm207_vm3, %v208_v31, 0.0 }
  0x22   :  { %361 = vmatpush.msra.mxu3 %v295_v14  ;;  %v211_v37 = vsel %vm210_vm4, %v209_v34, 0.0 }
  0x23   :  { %309 = vmatpush.msra.mxu2 %v294_v15  ;;  %v212_v39 = vrot.slane %v211_v37, 4 }
  0x24   :  { %362 = vmatpush.msra.mxu3 %v294_v15  ;;  %230 = vadd.xlane.f32.xlu0 %v229_v17 }
  0x25   :  { %310 = vmatpush.msra.mxu2 %v293_v18  ;;  %v213_v43 = vadd.f32 %v212_v39, %v211_v37  ;;  %v280_v39 = vstv %s680_s0  ;;  %s563_s0 = smov [#allocation13]  }
  0x26   :  { %354 = vmatmul.msk.f32.gmra.mxu0 %vm123_vm2, %v114_v11  ;;  %363 = vmatpush.msra.mxu3 %v293_v18  ;;  %s336_s15 = sshll.u32 %s563_s0, 4  ;;  %s337_s15 = int_to_ptr.vmem [resolvable:$true] %s336_s15 }
  0x27   :  { %311 = vmatpush.msra.mxu2 %v292_v19  ;;  %v214_v48 = vrot.slane %v213_v43, 2 }
  0x28   :  { %364 = vmatpush.msra.mxu3 %v292_v19 }
  0x29   :  { %312 = vmatpush.msra.mxu2 %v291_v20  ;;  %v215_v51 = vadd.f32 %v214_v48, %v213_v43 }
  0x2a   :  { %365 = vmatpush.msra.mxu3 %v291_v20 }
  0x2b   :  { %313 = vmatpush.msra.mxu2 %v290_v21  ;;  %v216_v57 = vrot.slane %v215_v51, 1 }
  0x2c   :  { %366 = vmatpush.msra.mxu3 %v290_v21 }
  0x2d   :  { %314 = vmatpush.msra.mxu2 %v289_v22  ;;  %v217_v61 = vadd.f32 %v216_v57, %v215_v51 }
  0x2e   :  { %367 = vmatpush.msra.mxu3 %v289_v22 }
  0x2f   :  { %315 = vmatpush.msra.mxu2 %v288_v23 }
  0x30   :  { %368 = vmatpush.msra.mxu3 %v288_v23 }
  0x31   :  { %316 = vmatpush.msra.mxu2 %v287_v24 }
  0x32   :  { %369 = vmatpush.msra.mxu3 %v287_v24 }
  0x33   :  { %317 = vmatpush.msra.mxu2 %v286_v26 }
  0x34   :  { %370 = vmatpush.msra.mxu3 %v286_v26 }
  0x35   :  { %318 = vmatpush.msra.mxu2 %v285_v29 }
  0x36   :  { %371 = vmatpush.msra.mxu3 %v285_v29 }
  0x37   :  { %319 = vmatpush.msra.mxu2 %v284_v30 }
  0x38   :  { %372 = vmatpush.msra.mxu3 %v284_v30 }
  0x39   :  { %320 = vmatpush.msra.mxu2 %v283_v32 }
  0x3a   :  { %373 = vmatpush.msra.mxu3 %v283_v32 }
  0x8f   :  { %v228_v14 = vpop.xlane.xlu0 %227 }
  0x97   :  { %v231_v18 = vpop.xlane.xlu0 %230 }
  0x99   :  { %v202_v55 = vpop.f32.mrf.mxu1 }
  0x9a   :  { %v218_v59 = vperm.slane %v202_v55, 0 }
  0x9b   :  { %v147_v35 = vpop.f32.mrf.mxu0 }
  0x9c   :  { %v148_v36 = vadd.f32 %v383_v33, %v147_v35 }
  0x9e   :  { %v153_v38 = vmul.f32 %v148_v36, %v148_v36 }
  0xa0   :  { %v155_v40 = vmul.f32 %v153_v38, %v148_v36 }
  0xa2   :  { %v157_v41 = vmul.f32 0.044715, %v155_v40 }
  0xa3   :  { %v150_v42 = vpop.f32.mrf.mxu0 }
  0xa4   :  { %v159_v44 = vadd.f32 %v157_v41, %v148_v36  ;;  %v151_v45 = vadd.f32 %v383_v33, %v150_v42 }
  0xa6   :  { %v154_v46 = vmul.f32 %v151_v45, %v151_v45  ;;  %v161_v47 = vmul.f32 0.7978846, %v159_v44  ;;  %v384_v44 = vld [vmem:[%s690_s10] ss:$0 sm:$0xff] }
  0xa8   :  { %v156_v49 = vmul.f32 %v154_v46, %v151_v45  ;;  %385 = vtanh.f32 %v161_v47 }
  0xaa   :  { %v158_v50 = vmul.f32 0.044715, %v156_v49 }
  0xac   :  { %v160_v52 = vadd.f32 %v158_v50, %v151_v45 }
  0xae   :  { %v386_v53 = vpop.eup %385  ;;  %v162_v54 = vmul.f32 0.7978846, %v160_v52 }
  0xaf   :  { %v165_v56 = vadd.f32 1.0, %v386_v53 }
  0xb0   :  { %387 = vtanh.f32 %v162_v54 }
  0xb1   :  { %v167_v58 = vmul.f32 0.5, %v165_v56  ;;  %389 = vrcp.f32 %v562_v8 }
  0xb3   :  { %v169_v60 = vmul.f32 %v167_v58, %v148_v36 }
  0xb5   :  { %v219_v62 = vadd.f32 %v218_v59, %v169_v60 }
  0xb6   :  { %v388_v63 = vpop.eup %387 }
  0xb7   :  { %v166_v1 = vadd.f32 1.0, %v388_v63  ;;  %v221_v2 = vadd.f32 %v219_v62, %v217_v61  ;;  %v390_v9 = vpop.eup %389 }
  0xb8   :  { %v233_v10 = vmul.f32 8.0, %v390_v9  ;;  %vm237_vm6 = vweird.f32 %v390_v9 }
  0xb9   :  { %v168_v3 = vmul.f32 0.5, %v166_v1  ;;  %321 = vmatmul.f32.vlgmr.msra.gmra.mxu2 %v221_v2 }
  0xba   :  { %v234_v11 = vsub.f32 1.0, %v233_v10 }
  0xbb   :  { %v170_v4 = vmul.f32 %v168_v3, %v151_v45 }
  0xbc   :  { %v235_v12 = vmul.f32 %v390_v9, %v234_v11 }
  0xbd   :  { %v177_v5 = vsel %vm175_vm5, %v170_v4, 0.0 }
  0xbe   :  { %v220_v6 = vadd.f32 %v218_v59, %v177_v5  ;;  %v236_v13 = vadd.f32 %v390_v9, %v235_v12 }
  0xc0   :  { %v222_v7 = vadd.f32 %v220_v6, %v217_v61  ;;  %v238_v15 = vsel %vm237_vm6, %v390_v9, %v236_v13 }
  0xc1   :  { %v239_v16 = vmul.f32 %v238_v15, %v228_v14  ;;  %v240_v19 = vmul.f32 %v238_v15, %v231_v18 }
  0xc2   :  { %324 = vmatmul.f32.vlgmr.msra.gmra.mxu3 %v222_v7 }
  0xc3   :  { %v356_v17 = vmul.f32 -1.442695, %v239_v16  ;;  %v357_v20 = vmul.f32 -1.442695, %v240_v19 }
  0xc5   :  { %391 = vpow2.f32 %v356_v17 }
  0xc6   :  { %393 = vpow2.f32 %v357_v20 }
  0xcb   :  { %v392_v21 = vpop.eup %391 }
  0xcc   :  { %v247_v22 = vadd.f32 1.0, %v392_v21  ;;  %v394_v23 = vpop.eup %393 }
  0xcd   :  { %v248_v24 = vadd.f32 1.0, %v394_v23 }
  0xce   :  { %395 = vrcp.f32 %v247_v22  ;;  %vm254_vm7 = vweird.f32 %v247_v22  ;;  %v260_v31 = vand.u32 2147483648, %v247_v22  ;;  %v258_v33 = vand.u32 2147483647, %v247_v22 }
  0xcf   :  { %397 = vrcp.f32 %v248_v24  ;;  %vm269_vm11 = vweird.f32 %v248_v24  ;;  %v275_v40 = vand.u32 2147483648, %v248_v24  ;;  %v273_v42 = vand.u32 2147483647, %v248_v24 }
  0xd0   :  { %v261_v35 = vor.u32 1.1754944e-38, %v260_v31  ;;  %vm259_vm10 = vcmp.eq.f32.partialorder %v258_v33, 8.507059e+37 }
  0xd1   :  { %v276_v45 = vor.u32 1.1754944e-38, %v275_v40  ;;  %vm274_vm14 = vcmp.eq.f32.partialorder %v273_v42, 8.507059e+37 }
  0xd4   :  { %v396_v25 = vpop.eup %395 }
  0xd5   :  { %v250_v26 = vmul.f32 %v396_v25, %v247_v22  ;;  %v398_v28 = vpop.eup %397  ;;  %vm255_vm8 = vweird.f32 %v396_v25 }
  0xd6   :  { %v265_v30 = vmul.f32 %v398_v28, %v248_v24  ;;  %vm256_vm9 = vmor %vm254_vm7, %vm255_vm8  ;;  %vm270_vm12 = vweird.f32 %v398_v28 }
  0xd7   :  { %v251_v27 = vsub.f32 1.0, %v250_v26  ;;  %vm271_vm13 = vmor %vm269_vm11, %vm270_vm12 }
  0xd8   :  { %v266_v34 = vsub.f32 1.0, %v265_v30 }
  0xd9   :  { %v252_v29 = vmul.f32 %v396_v25, %v251_v27 }
  0xda   :  { %v267_v37 = vmul.f32 %v398_v28, %v266_v34 }
  0xdb   :  { %v253_v32 = vadd.f32 %v396_v25, %v252_v29 }
  0xdc   :  { %v268_v41 = vadd.f32 %v398_v28, %v267_v37 }
  0xdd   :  { %v257_v36 = vsel %vm256_vm9, %v396_v25, %v253_v32 }
  0xde   :  { %v262_v38 = vsel %vm259_vm10, %v261_v35, %v257_v36  ;;  %v272_v46 = vsel %vm271_vm13, %v398_v28, %v268_v41 }
  0xdf   :  { %v281_v43 = vmul.f32 %v280_v39, %v262_v38  ;;  %v277_v50 = vsel %vm274_vm14, %v276_v45, %v272_v46 }
  0xe0   :  { %v282_v51 = vmul.f32 %v280_v39, %v277_v50 }
  0xe1   :  { %v303_v47 = vmul.f32 %v384_v44, %v281_v43 }
  0xe2   :  { %v304_v52 = vmul.f32 %v384_v44, %v282_v51 }
 0x13c   :  { %v322_v48 = vpop.f32.mrf.mxu2 }
 0x13d   :  { %v323_v49 = vadd.f32 %v322_v48, %v303_v47 }
 0x13f   :  { %399 = vtanh.f32 %v323_v49 }
 0x145   :  { %v400_v53 = vpop.eup %399  ;;  %v325_v54 = vpop.f32.mrf.mxu3 }
 0x146   :  { %330 = vst [vmem:[#allocation13] sm:$0xff] %v400_v53  ;;  %v326_v55 = vadd.f32 %v325_v54, %v304_v52 }
 0x148   :  { %401 = vtanh.f32 %v326_v55 }
 0x14e   :  { %v402_v56 = vpop.eup %401 }
 0x14f   :  { %331 = vst [vmem:[#allocation13 + $0x8] sm:$0xff] %v402_v56 }
 0x150   :  { %344 = dma.vmem_to_hbm [thread:$0]  %s337_s15, 256, %s339_s17, [#allocation6], %s556_s25, %s556_s25, %s557_s26  }
 0x151   :  { %553 = dma.done.wait [#allocation6], 256  }
 0x152   :  { %554 = vsyncadd [#allocation6], 4294967040 }
 0x153   :  { %349 = vsyncpa [#allocation5], 1 }
 0x154   :  { %350 = vsyncpa [#allocation8], 1 }
 0x155   :  { %351 = vsyncpa [#allocation11], 1 }
 0x156   :  { %352 = vsyncpa [#allocation6], 1 }

</bundles_post_ra>
